<compile_context>
chip_gen: v7x
topology: tpu7x:2x2x1
jax: 0.10.0
libtpu: 0.0.40
codegen_flags: <defaults>
</compile_context>

<pallas_src>
import functools

import jax
import jax.numpy as jnp
from jax.experimental import pallas as pl
from jax.experimental.pallas import tpu as pltpu

BS = 4  # block_size; the PyTorch module asserts block_size == 4

# TODO(synk): only the SpaceToDepth stem of TResNet is implemented as a Pallas
# kernel; the conv/InPlaceABN/SE/FC body of TResNet is out of scope here.


def _s2d_kernel(x_ref, csel_ref, o_ref, *, Wo, K):
    """One (image, slab-chunk) step of SpaceToDepth-as-selection-matmul.

    x_ref    : (1, R, 4*W)     rows r = c*Ho + ho, cols q = bh*W + 4*wo + bw
    csel_ref : (G, 4*W, K*Wo)  resident 0/1 selection matrix, chunked over g
    o_ref    : (1, K, R, Wo)   o[0, kl, r, wo] = x[c, 4*ho+bh, 4*wo+bw]
                               with bh*4 + bw = g*K + kl
    """
    g = pl.program_id(1)
    X = x_ref[0]                      # (R, 4W)
    S = csel_ref[g]                   # (4W, K*Wo); outer-dim dynamic index is a
                                      # plain address offset (no lane relayout).
    if jnp.issubdtype(X.dtype, jnp.floating):
        acc_dt = o_ref.dtype          # bf16 stays bf16 (exact for 0/1 select)
    else:
        acc_dt = jnp.float32
        X = X.astype(jnp.float32)

    # One MXU matmul gathers K (bh, bw) sub-grids at once (lane-dense N dim).
    T = jnp.dot(X, S, preferred_element_type=acc_dt)   # (R, K*Wo)

    # Split the K column slabs onto the output's slab axis (static slices).
    # TODO(synk): for Wo % 128 != 0 the slab starts are lane-misaligned; padding
    # each slab to 128 csel columns (extra MXU MACs) may help on v6e/v7x --
    # needs a benchmark.
    for kl in range(K):
        slab = T[:, kl * Wo:(kl + 1) * Wo]
        if slab.dtype != o_ref.dtype:
            slab = slab.astype(o_ref.dtype)
        o_ref[0, kl, :, :] = slab


def space_to_depth(x):
    """Pallas implementation of SpaceToDepth(block_size=4) for NCHW input."""
    N, C, H, W = x.shape
    assert H % BS == 0 and W % BS == 0
    Ho, Wo = H // BS, W // BS
    rows = C * Ho

    if jnp.issubdtype(x.dtype, jnp.floating):
        sel_dt = x.dtype
    else:
        # The f32 selection matmul is exact for integers with |x| < 2^24.
        assert jnp.iinfo(x.dtype).bits <= 16, "integer inputs wider than 16 bits unsupported"
        sel_dt = jnp.float32

    # Split the 16 (bh, bw) slabs into G chunks of K slabs -> grid axis g.
    # Guarantees >= 8 total grid steps (>= 4 per v7x TensorCore) even at
    # batch 1, while keeping the per-step MXU N-dim (K*Wo lanes) wide.
    if N == 1:
        G = 8
    elif N <= 3:
        G = 4
    else:
        G = 2
    K = 16 // G

    # Free row-major view (pure metadata, no data movement):
    #   xm[n, c*Ho+ho, bh*W + 4*wo + bw] = x[n, c, 4*ho+bh, 4*wo+bw]
    xm = x.reshape(N, rows, BS * W)

    # Precompute the 0/1 selection matrix ONCE (tiny XLA work), chunked over g:
    #   csel[g, q, kl*Wo + wo] = (q == bh*W + 4*wo + bw), k = g*K + kl = bh*4+bw
    j = jnp.arange(16 * Wo, dtype=jnp.int32)              # j = k*Wo + wo
    k_idx, wo_idx = j // Wo, j % Wo
    bh, bw = k_idx // BS, k_idx % BS
    src = bh * W + BS * wo_idx + bw                       # (16*Wo,)
    q = jnp.arange(BS * W, dtype=jnp.int32)
    csel = (q[:, None] == src[None, :]).astype(sel_dt)    # (4W, 16*Wo)
    csel = csel.reshape(BS * W, G, K * Wo).transpose(1, 0, 2)   # (G, 4W, K*Wo)

    # VMEM budget (conservative: count every operand double-buffered).
    x_bytes = rows * BS * W * jnp.dtype(x.dtype).itemsize
    csel_bytes = G * (BS * W) * (K * Wo) * jnp.dtype(sel_dt).itemsize
    out_blk_bytes = K * rows * Wo * jnp.dtype(x.dtype).itemsize
    t_bytes = rows * K * Wo * 4
    need = 2 * (x_bytes + csel_bytes + out_blk_bytes) + t_bytes + (1 << 20)
    vmem_limit = int(min(need + (8 << 20), 100 << 20)) if need > (16 << 20) else None

    cost = pl.CostEstimate(
        flops=2 * N * rows * (BS * W) * (16 * Wo),
        bytes_accessed=2 * N * x_bytes + csel_bytes,
        transcendentals=0,
    )

    # TODO(synk): on v5e with f32 inputs the selection matmul is MXU-bound past
    # the HBM roofline; a non-MXU (strided-slice) path would be faster there.

    out4 = pl.pallas_call(
        functools.partial(_s2d_kernel, Wo=Wo, K=K),
        out_shape=jax.ShapeDtypeStruct((N, 16, rows, Wo), x.dtype),
        grid_spec=pltpu.PrefetchScalarGridSpec(
            num_scalar_prefetch=0,
            grid=(N, G),
            in_specs=[
                # x: re-fetched only when n changes (index_map ignores g).
                pl.BlockSpec((1, rows, BS * W), lambda n, g: (n, 0, 0)),
                # csel: whole array resident for the entire kernel (one DMA).
                pl.BlockSpec((G, BS * W, K * Wo), lambda n, g: (0, 0, 0)),
            ],
            out_specs=pl.BlockSpec((1, K, rows, Wo), lambda n, g: (n, g, 0, 0)),
        ),
        compiler_params=pltpu.CompilerParams(
            dimension_semantics=("parallel", "parallel"),
            vmem_limit_bytes=vmem_limit,
        ),
        cost_estimate=cost,
    )(xm, csel)

    # (N, 16, C*Ho, Wo) -> (N, 16*C, Ho, Wo): pure reshape (no transpose);
    # final channel index = (bh*4+bw)*C + c, matching the PyTorch permute+view.
    return out4.reshape(N, 16 * C, Ho, Wo)


def space_to_depth_ref(x):
    """Pure-JAX reference mirroring the PyTorch forward exactly."""
    N, C, H, W = x.shape
    y = x.reshape(N, C, H // BS, BS, W // BS, BS)
    y = jnp.transpose(y, (0, 3, 5, 1, 2, 4))
    return y.reshape(N, C * BS * BS, H // BS, W // BS)


if __name__ == "__main__":
    key = jax.random.PRNGKey(0)
    N, C, H, W = 2, 4, 16, 16
    x = jax.random.normal(key, (N, C, H, W), dtype=jnp.float32)

    out = jax.block_until_ready(space_to_depth(x))
    ref = space_to_depth_ref(x)

    assert out.shape == (N, C * BS * BS, H // BS, W // BS), out.shape
    assert out.dtype == x.dtype
    assert jnp.allclose(out, ref, atol=1e-6, rtol=1e-6), "mismatch vs reference"
    print("KERNEL_OK")
</pallas_src>

<mosaic_0001>
module attributes {stable_mosaic.version = 11 : i64} {
  func.func @_s2d_kernel(%arg0: i32, %arg1: i32, %arg2: memref<1x16x64xf32, #tpu.memory_space<vmem>>, %arg3: memref<4x64x16xf32, #tpu.memory_space<vmem>>, %arg4: memref<1x4x16x4xf32, #tpu.memory_space<vmem>>) attributes {dimension_semantics = [#tpu.dimension_semantics<parallel>, #tpu.dimension_semantics<parallel>], iteration_bounds = array<i64: 2, 4>, scalar_prefetch = 0 : i64, scratch_operands = 0 : i64, tpu.core_type = #tpu.core_type<tc>, window_params = [{transform_indices = @transform_0, window_bounds = array<i64: 1, 16, 64>}, {pipeline_mode = #tpu.pipeline_mode<synchronous>, transform_indices = @transform_1, window_bounds = array<i64: 4, 64, 16>}, {transform_indices = @transform_2, window_bounds = array<i64: 1, 4, 16, 4>}]} {
    %c0 = arith.constant 0 : index
    %c0_0 = arith.constant 0 : index
    %c0_1 = arith.constant 0 : index
    %0 = vector.load %arg2[%c0, %c0_0, %c0_1] : memref<1x16x64xf32, #tpu.memory_space<vmem>>, vector<1x16x64xf32>
    %1 = vector.shape_cast %0 : vector<1x16x64xf32> to vector<16x64xf32>
    %2 = arith.index_cast %arg1 : i32 to index
    %c0_2 = arith.constant 0 : index
    %c0_3 = arith.constant 0 : index
    %3 = vector.load %arg3[%2, %c0_2, %c0_3] : memref<4x64x16xf32, #tpu.memory_space<vmem>>, vector<1x64x16xf32>
    %4 = vector.shape_cast %3 : vector<1x64x16xf32> to vector<64x16xf32>
    %cst = arith.constant dense<0.000000e+00> : vector<16x16xf32>
    %5 = tpu.matmul %1, %4, %cst {dimension_numbers = #tpu.dot_dimension_numbers<[1], [0], [0], [1], [0, 0, 1, 1], [], []>} : vector<16x64xf32>, vector<64x16xf32>, vector<16x16xf32> -> vector<16x16xf32>
    %6 = vector.extract_strided_slice %5 {offsets = [0, 0], sizes = [16, 4], strides = [1, 1]} : vector<16x16xf32> to vector<16x4xf32>
    %c0_4 = arith.constant 0 : index
    %c0_5 = arith.constant 0 : index
    %c0_6 = arith.constant 0 : index
    %c0_7 = arith.constant 0 : index
    %7 = vector.load %arg4[%c0_4, %c0_5, %c0_6, %c0_7] : memref<1x4x16x4xf32, #tpu.memory_space<vmem>>, vector<1x1x16x4xf32>
    %8 = vector.shape_cast %7 : vector<1x1x16x4xf32> to vector<16x4xf32>
    %9 = vector.shape_cast %6 : vector<16x4xf32> to vector<1x1x16x4xf32>
    tpu.vector_store %arg4[%c0_4, %c0_5, %c0_6, %c0_7], %9 {strides = array<i32>} : memref<1x4x16x4xf32, #tpu.memory_space<vmem>>, vector<1x1x16x4xf32>,
    %10 = vector.extract_strided_slice %5 {offsets = [0, 4], sizes = [16, 4], strides = [1, 1]} : vector<16x16xf32> to vector<16x4xf32>
    %c0_8 = arith.constant 0 : index
    %c1 = arith.constant 1 : index
    %c0_9 = arith.constant 0 : index
    %c0_10 = arith.constant 0 : index
    %11 = vector.load %arg4[%c0_8, %c1, %c0_9, %c0_10] : memref<1x4x16x4xf32, #tpu.memory_space<vmem>>, vector<1x1x16x4xf32>
    %12 = vector.shape_cast %11 : vector<1x1x16x4xf32> to vector<16x4xf32>
    %13 = vector.shape_cast %10 : vector<16x4xf32> to vector<1x1x16x4xf32>
    tpu.vector_store %arg4[%c0_8, %c1, %c0_9, %c0_10], %13 {strides = array<i32>} : memref<1x4x16x4xf32, #tpu.memory_space<vmem>>, vector<1x1x16x4xf32>,
    %14 = vector.extract_strided_slice %5 {offsets = [0, 8], sizes = [16, 4], strides = [1, 1]} : vector<16x16xf32> to vector<16x4xf32>
    %c0_11 = arith.constant 0 : index
    %c2 = arith.constant 2 : index
    %c0_12 = arith.constant 0 : index
    %c0_13 = arith.constant 0 : index
    %15 = vector.load %arg4[%c0_11, %c2, %c0_12, %c0_13] : memref<1x4x16x4xf32, #tpu.memory_space<vmem>>, vector<1x1x16x4xf32>
    %16 = vector.shape_cast %15 : vector<1x1x16x4xf32> to vector<16x4xf32>
    %17 = vector.shape_cast %14 : vector<16x4xf32> to vector<1x1x16x4xf32>
    tpu.vector_store %arg4[%c0_11, %c2, %c0_12, %c0_13], %17 {strides = array<i32>} : memref<1x4x16x4xf32, #tpu.memory_space<vmem>>, vector<1x1x16x4xf32>,
    %18 = vector.extract_strided_slice %5 {offsets = [0, 12], sizes = [16, 4], strides = [1, 1]} : vector<16x16xf32> to vector<16x4xf32>
    %c0_14 = arith.constant 0 : index
    %c3 = arith.constant 3 : index
    %c0_15 = arith.constant 0 : index
    %c0_16 = arith.constant 0 : index
    %19 = vector.load %arg4[%c0_14, %c3, %c0_15, %c0_16] : memref<1x4x16x4xf32, #tpu.memory_space<vmem>>, vector<1x1x16x4xf32>
    %20 = vector.shape_cast %19 : vector<1x1x16x4xf32> to vector<16x4xf32>
    %21 = vector.shape_cast %18 : vector<16x4xf32> to vector<1x1x16x4xf32>
    tpu.vector_store %arg4[%c0_14, %c3, %c0_15, %c0_16], %21 {strides = array<i32>} : memref<1x4x16x4xf32, #tpu.memory_space<vmem>>, vector<1x1x16x4xf32>,
    return
  }
  func.func @transform_0(%arg0: i32, %arg1: i32) -> (i32, i32, i32) {
    %c0_i32 = arith.constant 0 : i32
    %c0_i32_0 = arith.constant 0 : i32
    %c0_i32_1 = arith.constant 0 : i32
    return %arg0, %c0_i32, %c0_i32_0 : i32, i32, i32
  }
  func.func @transform_1(%arg0: i32, %arg1: i32) -> (i32, i32, i32) {
    %c0_i32 = arith.constant 0 : i32
    %c0_i32_0 = arith.constant 0 : i32
    %c0_i32_1 = arith.constant 0 : i32
    %c0_i32_2 = arith.constant 0 : i32
    return %c0_i32, %c0_i32_0, %c0_i32_1 : i32, i32, i32
  }
  func.func @transform_2(%arg0: i32, %arg1: i32) -> (i32, i32, i32, i32) {
    %c0_i32 = arith.constant 0 : i32
    %c0_i32_0 = arith.constant 0 : i32
    %c0_i32_1 = arith.constant 0 : i32
    return %arg0, %arg1, %c0_i32, %c0_i32_0 : i32, i32, i32, i32
  }
}

</mosaic_0001>

<bundles_post_ra>
// kernel: tpu_custom_call.1
= control target key start
LH: loop header
LB: loop body
LE: loop exit
PB: predicated region body
PF: predicated region fallthrough
CT: control target
= control target key end

     0   :  { %s556_s9 = smov 0   ;;  %s558_s10 = smov 0   ;;  %s628_s0 = inlined_call_operand.vmem [shape: f32[2,16,64], index: 0, kind: input, shape index: {}]   ;;  %s629_s1 = inlined_call_operand.vmem [shape: f32[4,64,16], index: 1, kind: input, shape index: {}]   ;;  %s630_s2 = inlined_call_operand.vmem [shape: f32[2,16,16,4], index: 2, kind: output, shape index: {}]  }
   0x1   :  { %s560_s11 = smov 0   ;;  %s562_s12 = smov 0  }
   0x2   :  { %s564_s13 = smov 0  }
   0x3 LB: > { %s21_s14 = sadd.s32 1, %s528_s11  ;;  %s24_s15 = sadd.s32 1, %s532_s12  ;;  %s536_s13 = sphi %s564_s13, %s12_s13   ;;  %s532_s12 = sphi %s562_s12, %s634_s12   ;;  %s528_s11 = sphi %s560_s11, %s633_s11   ;;  %s524_s10 = sphi %s558_s10, %s632_s10   ;;  %s520_s9 = sphi %s556_s9, %s631_s9  }
   0x4   : > { %p22_p0 = scmp.ge.s32.totalorder %s21_s14, 4  ;;  %p391_p1 = scmp.ge.s32.totalorder %s536_s13, 1 }
   0x5   : > { %p126_p2 = scmp.lt.s32.totalorder %s536_s13, 9 }
   0x6   : > { %s636_s14 = smov (%p22_p0, %s21_s14), 0  ;;  %s638_s15 = smov (!%p22_p0, %s24_s15), %s532_s12 }
   0x7   : > { %p127_p3 = pnand %p391_p1, %p126_p2  ;;  %p26_p4 = scmp.ge.s32.totalorder %s638_s15, 2 }
   0x8   : > { %s398_s16 = sshll.u32 (!%p127_p3), %s520_s9, 6  ;;  %p153_p5 = scmp.lt.s32.totalorder (!%p127_p3), %s524_s10, 1  ;;  %vm181_vm0 = vcmask (!%p127_p3), 523264   ;;  %vm263_vm1 = vcmask (!%p127_p3), 31744  }
   0x9   : > { %s640_s15 = smov (%p26_p4, %s638_s15), 0  ;;  %130 = sbr.rel (%p127_p3) target bundleno = 366 (0x16e), region = 28 }
   0xa   : > { %s172_s19 = scalar_lea.vmem (!%p127_p3), %s629_s1, %s398_s16  ;;  %s394_s24 = sshll.u32 (!%p127_p3), %s520_s9, 2 }
   0xb   : > { %v173_v0 = vld [vmem:[%s172_s19] sm:$0xff] (!%p127_p3)  ;;  %v174_v1 = vld [vmem:[%s172_s19 + $0x8] sm:$0xff] (!%p127_p3)  ;;  %v175_v2 = vld [vmem:[%s172_s19 + $0x10] sm:$0xff] (!%p127_p3)  ;;  %p161_p6 = scmp.lt.s32.totalorder (!%p127_p3), %s394_s24, 15  ;;  %s538_s4 = smov (!%p127_p3), 120  }
   0xc   : > { %v439_v3 = vpack.c.bf16 (!%p127_p3), %v174_v1, %v173_v0  ;;  %v176_v4 = vld [vmem:[%s172_s19 + $0x18] sm:$0xff] (!%p127_p3)  ;;  %v177_v6 = vld [vmem:[%s172_s19 + $0x20] sm:$0xff] (!%p127_p3)  ;;  %v178_v7 = vld [vmem:[%s172_s19 + $0x28] sm:$0xff] (!%p127_p3)  ;;  %s539_s5 = smov (!%p127_p3), 124   ;;  %s540_s6 = smov (!%p127_p3), 116  }
   0xd   : > { %v443_v5 = vpack.c.bf16 (!%p127_p3), %v176_v4, %v175_v2  ;;  %v447_v9 = vpack.c.bf16 (!%p127_p3), %v178_v7, %v177_v6  ;;  %v179_v10 = vld [vmem:[%s172_s19 + $0x30] sm:$0xff] (!%p127_p3)  ;;  %v180_v11 = vld [vmem:[%s172_s19 + $0x38] sm:$0xff] (!%p127_p3) }
   0xe   : > { %440 = vmatprep.subr.bf16.mxu0 (!%p127_p3), %v439_v3  ;;  %v451_v12 = vpack.c.bf16 (!%p127_p3), %v180_v11, %v179_v10 }
   0xf   : > { %442 = vmatpush3.bf16.msra.mxu0 (!%p127_p3), %v439_v3 }
  0x10   : > { %s642_s10 = smov (!%p153_p5, %s524_s10), 1  ;;  %444 = vmatprep.subr.bf16.mxu0 %v443_v5  ;;  %s644_s24 = smov (!%p161_p6, %s394_s24), 15 }
  0x11   : > { %s409_s20 = sshll.u32 %s642_s10, 4  ;;  %s395_s25 = sshll.u32 %s644_s24, 1 }
  0x12   : > { %s157_s23 = scalar_lea.vmem %s628_s0, %s409_s20  ;;  %s396_s26 = sshll.u32 %s642_s10, 5 }
  0x13   : > { %v169_v8 = vld [vmem:[%s157_s23] sm:$0xff]  ;;  %446 = vmatpush3.bf16.msra.mxu0 %v443_v5  ;;  %v170_v13 = vld [vmem:[%s157_s23 + $0x8] sm:$0xff]  ;;  %s165_s27 = sadd.s32 %s396_s26, %s395_s25 }
  0x14   : > { %436 = vmatprep.mubr.msk.f32.mxu0 %vm181_vm0, %v169_v8  ;;  %448 = vmatprep.subr.bf16.mxu0 %v447_v9  ;;  %s397_s28 = sshll.u32 %s165_s27, 3 }
  0x15   : > { %s167_s3 = scalar_lea.vmem %s630_s2, %s397_s28 }
  0x17   : > { %450 = vmatpush3.bf16.msra.mxu0 %v447_v9 }
  0x18   : > { %452 = vmatprep.subr.bf16.mxu0 %v451_v12 }
  0x1b   : > { %454 = vmatpush3.bf16.msra.mxu0 %v451_v12 }
  0x1e   : > { %437 = vmatmul.mubr.msk.f32.vlgmr.msra.gmra.mrb[0].mxu0 %vm181_vm0, %v170_v13 }
  0xf1   : > { %v438_v14 = vpop.f32.mrb[0].mxu0 }
  0xf2   : > { %265 = vst.msk [vmem:[%s167_s3 + $0x8] sm:$0xff] %vm263_vm1, %v438_v14  ;;  %279 = vrot.lane.b32.xlu1 %v438_v14, %s538_s4  ;;  %270 = vrot.lane.b32.xlu0 %v438_v14, %s539_s5  ;;  %v254_v15 = vpop.f32.mrb[1].mxu0 }
  0xf3   : > { %264 = vst.msk [vmem:[%s167_s3] sm:$0xff] %vm263_vm1, %v254_v15 }
  0xf6   : > { %277 = vrot.lane.b32.xlu1 %v254_v15, %s538_s4  ;;  %268 = vrot.lane.b32.xlu0 %v254_v15, %s539_s5 }
  0xfa   : > { %288 = vrot.lane.b32.xlu1 %v438_v14, %s540_s6  ;;  %286 = vrot.lane.b32.xlu0 %v254_v15, %s540_s6 }
 0x164   : > { %v280_v16 = vpop.permute.xlu1 %279  ;;  %v271_v17 = vpop.permute.xlu0 %270 }
 0x165   : > { %404 = vst.msk [vmem:[%s167_s3 + $0x28] sm:$0xff] %vm263_vm1, %v280_v16  ;;  %402 = vst.msk [vmem:[%s167_s3 + $0x18] sm:$0xff] %vm263_vm1, %v271_v17 }
 0x168   : > { %v278_v18 = vpop.permute.xlu1 %277  ;;  %v269_v19 = vpop.permute.xlu0 %268 }
 0x169   : > { %403 = vst.msk [vmem:[%s167_s3 + $0x20] sm:$0xff] %vm263_vm1, %v278_v18  ;;  %401 = vst.msk [vmem:[%s167_s3 + $0x10] sm:$0xff] %vm263_vm1, %v269_v19 }
 0x16c   : > { %v289_v20 = vpop.permute.xlu1 %288  ;;  %v287_v21 = vpop.permute.xlu0 %286 }
 0x16d   : > { %406 = vst.msk [vmem:[%s167_s3 + $0x38] sm:$0xff] %vm263_vm1, %v289_v20  ;;  %405 = vst.msk [vmem:[%s167_s3 + $0x30] sm:$0xff] %vm263_vm1, %v287_v21 }
 0x16e PF: > { %s12_s13 = sadd.s32 1, %s536_s13   ;;  %s631_s9 = smov %s528_s11 }
 0x16f   : > { %p9_p7 = scmp.ge.s32.totalorder %s12_s13, 10   ;;  %s632_s10 = smov %s532_s12 }
 0x170   : > { %s633_s11 = smov %s636_s14  ;;  %s634_s12 = smov %s640_s15 }
 0x171   :  { %11 = sbr.rel (!%p9_p7) target bundleno = 3 (0x3), region = 62 }

</bundles_post_ra>
